<compile_context>
chip_gen: v5e
topology: v5e:2x2
jax: 0.10.0
libtpu: 0.0.40
codegen_flags: <defaults>
</compile_context>

<pallas_src>
import jax
import jax.numpy as jnp
from jax.experimental import pallas as pl
from jax.experimental.pallas import tpu as pltpu

D_IN = 10   # fc1 in_features / fc2 out_features
D_H = 5     # fc1 out_features / fc2 in_features

# Row offsets of each parameter section inside the packed slab (8-aligned).
_W1T_OFF = 0    # rows  0:10  -> w1.T padded to [10,10] (cols 5:10 zero)
_B1_OFF = 16    # row  16     -> b1  padded to [1,10]   (cols 5:10 zero)
_W2T_OFF = 24   # rows 24:34  -> w2.T padded to [10,10] (rows 5:10 zero)
_B2_OFF = 40    # row  40     -> b2  [1,10]
_SLAB_ROWS = 48


def pack_params(w1, b1, w2, b2):
    """One-time (model-init) packing of fc1/fc2 params into a single VMEM slab.

    w1: [5,10], b1: [5], w2: [10,5], b2: [10]  (torch nn.Linear layout).
    Pure data movement — no per-call cost, no reassociation of the math.
    """
    p = jnp.zeros((_SLAB_ROWS, D_IN), dtype=jnp.float32)
    p = p.at[_W1T_OFF:_W1T_OFF + D_IN, 0:D_H].set(w1.T.astype(jnp.float32))
    p = p.at[_B1_OFF, 0:D_H].set(b1.astype(jnp.float32))
    p = p.at[_W2T_OFF:_W2T_OFF + D_H, :].set(w2.T.astype(jnp.float32))
    p = p.at[_B2_OFF, :].set(b2.astype(jnp.float32))
    return p


def m_kernel(inp_ref, params_ref, out_ref):
    inp = inp_ref[...]                                     # [N, 10] f32

    # Slice each section straight from the Ref (8-aligned row offsets ->
    # clean sublane-aligned loads, no value-level shuffles).
    w1t = params_ref[_W1T_OFF:_W1T_OFF + D_IN, :]          # [10,10], cols 5:10 == 0
    b1 = params_ref[_B1_OFF:_B1_OFF + 1, :]                # [1,10],  cols 5:10 == 0
    w2t = params_ref[_W2T_OFF:_W2T_OFF + D_IN, :]          # [10,10], rows 5:10 == 0
    b2 = params_ref[_B2_OFF:_B2_OFF + 1, :]                # [1,10]

    # fc1 then fc2, computed in padded [*,10] space.  Padding cols of x1 are
    # exactly 0 (zero weight cols + zero bias), and the zero rows of w2t kill
    # them in the second matmul, so this matches the unfused torch math exactly.
    x1 = jnp.dot(inp, w1t, preferred_element_type=jnp.float32) + b1    # [N,10]
    x2 = jnp.dot(x1, w2t, preferred_element_type=jnp.float32) + b2     # [N,10]

    # x3 = inp.T @ x2 : contract over the batch axis (transposed-LHS matmul,
    # handled natively by the MXU; no explicit transpose materialized).
    x3 = jax.lax.dot_general(inp, x2, (((0,), (0,)), ((), ())),
                             preferred_element_type=jnp.float32)        # [10,10]

    # x4 = x3 + 1 ; x5 = x6 = x3 @ x4 ; out = x5 + x6  (bit-exact epilogue)
    x4 = x3 + 1.0
    x5 = jnp.dot(x3, x4, preferred_element_type=jnp.float32)            # [10,10]
    out_ref[...] = (x5 + x5)[None, :, :]                                 # [1,10,10]


def m_forward(inp, params):
    """inp: [N,10] f32; params: packed slab from pack_params (built once at init)."""
    return pl.pallas_call(
        m_kernel,
        # Emit the torch-shaped [1,10,10] output directly (no wrapper reshape).
        out_shape=jax.ShapeDtypeStruct((1, D_IN, D_IN), jnp.float32),
        # No grid: single invocation, no pipeline scaffolding; whole arrays in VMEM.
        in_specs=[
            pl.BlockSpec(memory_space=pltpu.MemorySpace.VMEM),
            pl.BlockSpec(memory_space=pltpu.MemorySpace.VMEM),
        ],
        out_specs=pl.BlockSpec(memory_space=pltpu.MemorySpace.VMEM),
        # Tell XLA's scheduler this custom call is tiny.
        cost_estimate=pl.CostEstimate(flops=7000, transcendentals=0,
                                      bytes_accessed=2700),
    )(inp, params)


m_forward_jit = jax.jit(m_forward)


def m_forward_ref(inp, w1, b1, w2, b2):
    """Pure-JAX reference mirroring the PyTorch forward exactly (unfused)."""
    x1 = inp @ w1.T + b1
    x2 = x1 @ w2.T + b2
    x3 = (inp.T @ x2)[None]
    x4 = (inp.T @ x2)[None] + 1.0
    x5 = jnp.einsum("bij,bjk->bik", x3, x4)
    x6 = jnp.einsum("bij,bjk->bik", x3, x4)
    return x5 + x6


if __name__ == "__main__":
    key = jax.random.PRNGKey(0)
    k_inp, k_w1, k_b1, k_w2, k_b2 = jax.random.split(key, 5)

    N = 8
    inp = jax.random.normal(k_inp, (N, D_IN), dtype=jnp.float32)
    # torch.nn.Linear weight layout: [out_features, in_features]
    w1 = jax.random.normal(k_w1, (D_H, D_IN), dtype=jnp.float32) * 0.1
    b1 = jax.random.normal(k_b1, (D_H,), dtype=jnp.float32) * 0.1
    w2 = jax.random.normal(k_w2, (D_IN, D_H), dtype=jnp.float32) * 0.1
    b2 = jax.random.normal(k_b2, (D_IN,), dtype=jnp.float32) * 0.1

    # One-time model-init packing (NOT on the per-call path).
    params = pack_params(w1, b1, w2, b2)
    jax.block_until_ready(params)

    out = m_forward_jit(inp, params)
    jax.block_until_ready(out)

    ref = m_forward_ref(inp, w1, b1, w2, b2)
    assert out.shape == (1, D_IN, D_IN), out.shape
    assert jnp.allclose(out, ref, rtol=1e-5, atol=1e-5), float(jnp.abs(out - ref).max())

    print("KERNEL_OK")
</pallas_src>

<mosaic_0001>
module attributes {stable_mosaic.version = 11 : i64} {
  func.func @m_kernel(%arg0: memref<8x10xf32, #tpu.memory_space<vmem>>, %arg1: memref<48x10xf32, #tpu.memory_space<vmem>>, %arg2: memref<1x10x10xf32, #tpu.memory_space<vmem>>) attributes {dimension_semantics = [], scalar_prefetch = 0 : i64, scratch_operands = 0 : i64, tpu.core_type = #tpu.core_type<tc>} {
    %c0 = arith.constant 0 : index
    %c0_0 = arith.constant 0 : index
    %0 = vector.load %arg0[%c0, %c0_0] : memref<8x10xf32, #tpu.memory_space<vmem>>, vector<8x10xf32>
    %c0_1 = arith.constant 0 : index
    %c0_2 = arith.constant 0 : index
    %1 = vector.load %arg1[%c0_1, %c0_2] : memref<48x10xf32, #tpu.memory_space<vmem>>, vector<10x10xf32>
    %c16 = arith.constant 16 : index
    %c0_3 = arith.constant 0 : index
    %2 = vector.load %arg1[%c16, %c0_3] : memref<48x10xf32, #tpu.memory_space<vmem>>, vector<1x10xf32>
    %c24 = arith.constant 24 : index
    %c0_4 = arith.constant 0 : index
    %3 = vector.load %arg1[%c24, %c0_4] : memref<48x10xf32, #tpu.memory_space<vmem>>, vector<10x10xf32>
    %c40 = arith.constant 40 : index
    %c0_5 = arith.constant 0 : index
    %4 = vector.load %arg1[%c40, %c0_5] : memref<48x10xf32, #tpu.memory_space<vmem>>, vector<1x10xf32>
    %cst = arith.constant dense<0.000000e+00> : vector<8x10xf32>
    %5 = tpu.matmul %0, %1, %cst {dimension_numbers = #tpu.dot_dimension_numbers<[1], [0], [0], [1], [0, 0, 1, 1], [], []>} : vector<8x10xf32>, vector<10x10xf32>, vector<8x10xf32> -> vector<8x10xf32>
    %6 = vector.broadcast %2 : vector<1x10xf32> to vector<8x10xf32>
    %7 = arith.addf %5, %6 : vector<8x10xf32>
    %cst_6 = arith.constant dense<0.000000e+00> : vector<8x10xf32>
    %8 = tpu.matmul %7, %3, %cst_6 {dimension_numbers = #tpu.dot_dimension_numbers<[1], [0], [0], [1], [0, 0, 1, 1], [], []>} : vector<8x10xf32>, vector<10x10xf32>, vector<8x10xf32> -> vector<8x10xf32>
    %9 = vector.broadcast %4 : vector<1x10xf32> to vector<8x10xf32>
    %10 = arith.addf %8, %9 : vector<8x10xf32>
    %cst_7 = arith.constant dense<0.000000e+00> : vector<10x10xf32>
    %11 = tpu.matmul %0, %10, %cst_7 {dimension_numbers = #tpu.dot_dimension_numbers<[0], [0], [1], [1], [0, 1, 1, 1], [], []>} : vector<8x10xf32>, vector<8x10xf32>, vector<10x10xf32> -> vector<10x10xf32>
    %cst_8 = arith.constant 1.000000e+00 : f32
    %12 = vector.broadcast %cst_8 : f32 to vector<10x10xf32>
    %13 = arith.addf %11, %12 : vector<10x10xf32>
    %cst_9 = arith.constant dense<0.000000e+00> : vector<10x10xf32>
    %14 = tpu.matmul %11, %13, %cst_9 {dimension_numbers = #tpu.dot_dimension_numbers<[1], [0], [0], [1], [0, 0, 1, 1], [], []>} : vector<10x10xf32>, vector<10x10xf32>, vector<10x10xf32> -> vector<10x10xf32>
    %15 = arith.addf %14, %14 : vector<10x10xf32>
    %16 = vector.shape_cast %15 : vector<10x10xf32> to vector<1x10x10xf32>
    %c0_10 = arith.constant 0 : index
    %c0_11 = arith.constant 0 : index
    %c0_12 = arith.constant 0 : index
    %17 = vector.load %arg2[%c0_10, %c0_11, %c0_12] : memref<1x10x10xf32, #tpu.memory_space<vmem>>, vector<1x10x10xf32>
    tpu.vector_store %arg2[%c0_10, %c0_11, %c0_12], %16 {strides = array<i32>} : memref<1x10x10xf32, #tpu.memory_space<vmem>>, vector<1x10x10xf32>,
    return
  }
}

</mosaic_0001>

<bundles_post_ra>
// kernel: m_forward.1
= control target key start
LH: loop header
LB: loop body
LE: loop exit
PB: predicated region body
PF: predicated region fallthrough
CT: control target
= control target key end

     0   :  { %vm23_vm0 = vcmask 1041408   ;;  %vm19_vm1 = vcmask 80896   ;;  %vm106_vm2 = vcmask 64512   ;;  %vm173_vm3 = vcmask 74752   ;;  %s241_s1 = inlined_call_operand.vmem [shape: f32[48,10], index: 1, kind: input, shape index: {}]   ;;  %s242_s0 = inlined_call_operand.vmem [shape: f32[8,10], index: 0, kind: input, shape index: {}]   ;;  %s243_s2 = inlined_call_operand.vmem [shape: f32[1,10,10], index: 2, kind: output, shape index: {}]  }
   0x1   :  { %v13_v0 = vld [vmem:[%s241_s1 + $0x8] sm:$0x3]  ;;  %v12_v1 = vld [vmem:[%s241_s1] sm:$0xff]  ;;  %v15_v4 = vld [vmem:[%s241_s1 + $0x18] sm:$0xff] }
   0x2   :  { %v11_v2 = vld [vmem:[%s242_s0] sm:$0xff]  ;;  %179 = vmatpush.msk.msra.mxu0 %vm23_vm0, %v13_v0  ;;  %v189_v5 = vld [vmem:[%s241_s1 + $0x10] ss:$0 sm:$0xff]  ;;  %v190_v8 = vld [vmem:[%s241_s1 + $0x28] ss:$0 sm:$0xff] }
   0x3   :  { %74 = vxpose.xlu0.b32.start.end [1/1] (short) (narrow) %v11_v2, 16  ;;  %v16_v3 = vld [vmem:[%s241_s1 + $0x20] sm:$0x3] }
   0x4   :  { %42 = vmatpush.msra.mxu0 %v12_v1  ;;  %181 = vmatpush.msk.msra.mxu1 %vm23_vm0, %v16_v3 }
   0x5   :  { %180 = vmatmul.msk.f32.vlgmr.msra.gmra.mxu0 %vm19_vm1, %v11_v2 }
   0x6   :  { %69 = vmatpush.msra.mxu1 %v15_v4 }
  0x82   :  { %v44_v6 = vpop.f32.mrf.mxu0 }
  0x83   :  { %v45_v7 = vadd.f32 %v189_v5, %v44_v6 }
  0x85   :  { %182 = vmatmul.msk.f32.vlgmr.msra.gmra.mxu1 %vm19_vm1, %v45_v7 }
  0xa7   :  { %v90_v9 = vpop.trf.xlu0 }
  0xaf   :  { %v91_v12 = vpop.trf.xlu0 }
 0x102   :  { %v71_v10 = vpop.f32.mrf.mxu1 }
 0x103   :  { %v72_v11 = vadd.f32 %v190_v8, %v71_v10 }
 0x105   :  { %128 = vmatpush.msra.mxu2 %v72_v11 }
 0x106   :  { %183 = vmatmul.msk.f32.vlgmr.msra.gmra.mxu2 %vm106_vm2, %v90_v9 }
 0x10e   :  { %184 = vmatmul.msk.f32.gmra.mxu2 %vm106_vm2, %v91_v12 }
 0x189   :  { %v130_v13 = vpop.f32.mrf.mxu2 }
 0x18a   :  { %v136_v16 = vadd.f32 1.0, %v130_v13 }
 0x191   :  { %v133_v14 = vpop.f32.mrf.mxu2 }
 0x192   :  { %v137_v15 = vadd.f32 1.0, %v133_v14 }
 0x194   :  { %185 = vmatpush.msk.msra.mxu3 %vm23_vm0, %v137_v15 }
 0x196   :  { %162 = vmatpush.msra.mxu3 %v136_v16 }
 0x197   :  { %186 = vmatmul.msk.f32.vlgmr.msra.gmra.mxu3 %vm19_vm1, %v130_v13 }
 0x19f   :  { %187 = vmatmul.msk.f32.gmra.mxu3 %vm19_vm1, %v133_v14 }
 0x21a   :  { %v164_v17 = vpop.f32.mrf.mxu3 }
 0x21b   :  { %v170_v18 = vadd.f32 %v164_v17, %v164_v17 }
 0x21d   :  { %172 = vst.msk [vmem:[%s243_s2] sm:$0xff] %vm19_vm1, %v170_v18 }
 0x222   :  { %v167_v19 = vpop.f32.mrf.mxu3 }
 0x223   :  { %v171_v20 = vadd.f32 %v167_v19, %v167_v19 }
 0x225   :  { %174 = vst.msk [vmem:[%s243_s2 + $0x8] sm:$0x3] %vm173_vm3, %v171_v20 }

</bundles_post_ra>
